<compile_context>
chip_gen: v7x
topology: tpu7x:2x2x1
jax: 0.10.0
libtpu: 0.0.40
codegen_flags: <defaults>
</compile_context>

<pallas_src>
import functools

import jax
import jax.numpy as jnp
from jax.experimental import pallas as pl
from jax.experimental.pallas import tpu as pltpu


def _elbo_kernel(y_pred_ref, y_true_ref, mean_ref, logvar_ref, out_ref, *, beta):
    # Upcast on the VPU so bf16/f16 inputs need no wrapper-side convert (which
    # would cost an extra HBM round trip on a memory-bound op) and so the
    # feature-axis sums accumulate in f32.
    yp = y_pred_ref[...].astype(jnp.float32)
    yt = y_true_ref[...].astype(jnp.float32)
    mu = mean_ref[...].astype(jnp.float32)
    lv = logvar_ref[...].astype(jnp.float32)

    # MSELoss(reduction='none')(y_pred, y_true).sum(-1)
    diff = yp - yt
    recon = jnp.sum(diff * diff, axis=-1)                            # [tB]

    # KL = -0.5 * (logvar + 1 - mean^2 - exp(logvar)).sum(-1)
    kl = -0.5 * jnp.sum(lv + 1.0 - mu * mu - jnp.exp(lv), axis=-1)   # [tB]

    total = recon + beta * kl

    # Lane-dense stores: rows = (total, recon, kl), lanes = batch tile.
    out_ref[0, :] = total
    out_ref[1, :] = recon
    out_ref[2, :] = kl


def _vmem_budgets():
    """(per-step input-byte budget, scoped vmem_limit_bytes), per TPU generation."""
    try:
        cap = pltpu.get_tpu_info().vmem_capacity_bytes
    except Exception:
        cap = 64 * 1024 * 1024            # unknown -> assume smallest (v7x-like)
    if cap >= 96 * 1024 * 1024:           # v5e / v6e: 128 MiB physical VMEM
        return 16 * 1024 * 1024, 64 * 1024 * 1024
    # v7x: 64 MiB physical VMEM per TensorCore -> keep 2x double-buffered
    # input tiles + f32 intermediates + output buffers comfortably inside it.
    return 12 * 1024 * 1024, 48 * 1024 * 1024


def _choose_tile_b(B, D, L, y_itemsize, lat_itemsize, per_step_budget):
    """Batch-tile rows per grid step, sized purely on bytes (no row cap).

    The (3, tile_b) output block requires tile_b to be a multiple of 128
    (fully lane-dense, unmasked stores) unless tile_b == B.
    """
    # Per-row VMEM footprint: the four native-dtype input tiles plus headroom
    # for their f32 upcasts / intermediates inside the kernel.
    bytes_per_row = (2 * D * y_itemsize + 2 * L * lat_itemsize
                     + 2 * (D + L) * 4)
    tile = int(per_step_budget // max(bytes_per_row, 1))

    if B <= 256 or tile >= B:
        if B >= 256:
            # Whole batch would fit in one block: still split into 2 grid
            # steps so v7x's second TensorCore gets work under "parallel".
            half = ((pl.cdiv(B, 2) + 127) // 128) * 128
            return min(half, B)
        return B                           # small batch: single block (== B)

    # Multi-step grid: floor to a multiple of 128 for the lane-dense output.
    return max(128, (tile // 128) * 128)


def elbo_loss(y_pred, y_true, mean, log_variance, beta, reduction="none",
              tile_b=None):
    """Pallas implementation of ELBOLoss.forward.

    Returns (total, reconstruction, kl_divergence), matching the PyTorch module.
    """
    assert y_pred.shape == y_true.shape and y_pred.ndim == 2
    assert mean.shape == log_variance.shape and mean.ndim == 2
    B, D = y_pred.shape
    L = mean.shape[1]
    assert mean.shape[0] == B

    beta = float(beta)                     # compile-time constant (closed over)
    per_step_budget, vmem_limit = _vmem_budgets()

    if tile_b is None:
        tile_b = _choose_tile_b(B, D, L,
                                jnp.dtype(y_pred.dtype).itemsize,
                                jnp.dtype(mean.dtype).itemsize,
                                per_step_budget)
    grid = (pl.cdiv(B, tile_b),)           # trailing partial tile is clipped

    out = pl.pallas_call(
        functools.partial(_elbo_kernel, beta=beta),
        out_shape=jax.ShapeDtypeStruct((3, B), jnp.float32),
        grid=grid,
        in_specs=[
            pl.BlockSpec((tile_b, D), lambda i: (i, 0)),   # y_pred
            pl.BlockSpec((tile_b, D), lambda i: (i, 0)),   # y_true
            pl.BlockSpec((tile_b, L), lambda i: (i, 0)),   # mean
            pl.BlockSpec((tile_b, L), lambda i: (i, 0)),   # log_variance
        ],
        out_specs=pl.BlockSpec((3, tile_b), lambda i: (0, i)),
        compiler_params=pltpu.CompilerParams(
            dimension_semantics=("parallel",),   # shard batch over v7x's 2 TCs
            vmem_limit_bytes=vmem_limit,
        ),
    )(y_pred, y_true, mean, log_variance)

    total, recon, kl = out[0], out[1], out[2]

    if reduction == "mean":
        # Matches PyTorch: mean over batch first, then combine (equal to the
        # mean of per-sample totals by linearity).
        recon_m = recon.mean()
        kl_m = kl.mean()
        return recon_m + jnp.float32(beta) * kl_m, recon_m, kl_m

    return total, recon, kl


def _elbo_ref(y_pred, y_true, mean, log_variance, beta):
    recon = jnp.sum((y_pred - y_true) ** 2, axis=-1)
    kl = -0.5 * jnp.sum(log_variance + 1.0 - mean ** 2 - jnp.exp(log_variance),
                        axis=-1)
    return recon + beta * kl, recon, kl


if __name__ == "__main__":
    beta = 0.5
    base_key = jax.random.PRNGKey(0)

    def make(B, D, L, dtype, salt):
        k = jax.random.fold_in(base_key, salt)
        k1, k2, k3, k4 = jax.random.split(k, 4)
        y_pred = jax.random.normal(k1, (B, D), dtype=jnp.float32).astype(dtype)
        y_true = jax.random.normal(k2, (B, D), dtype=jnp.float32).astype(dtype)
        mean = jax.random.normal(k3, (B, L), dtype=jnp.float32).astype(dtype)
        lv = (0.1 * jax.random.normal(k4, (B, L), dtype=jnp.float32)).astype(dtype)
        return y_pred, y_true, mean, lv

    # Case 1: small f32 inputs, whole batch as a single block (tile_b == B).
    args = make(8, 128, 32, jnp.float32, 0)
    out = elbo_loss(*args, beta)
    jax.block_until_ready(out)
    ref = _elbo_ref(*args, beta)
    for o, r in zip(out, ref):
        assert jnp.allclose(o, r, rtol=1e-5, atol=1e-5), "case1 mismatch"

    # Case 2: multi-step lane-dense grid, B an exact multiple of tile_b.
    args = make(640, 256, 16, jnp.float32, 1)
    out = elbo_loss(*args, beta, tile_b=128)          # grid = (5,)
    jax.block_until_ready(out)
    ref = _elbo_ref(*args, beta)
    for o, r in zip(out, ref):
        assert jnp.allclose(o, r, rtol=1e-5, atol=1e-5), "case2 mismatch"

    # Case 3: auto tile selection (megacore split path: B >= 256 -> 2 steps).
    out = elbo_loss(*args, beta)
    jax.block_until_ready(out)
    for o, r in zip(out, ref):
        assert jnp.allclose(o, r, rtol=1e-5, atol=1e-5), "case3 mismatch"

    # Case 4: trailing partial batch tile (B % tile_b != 0).
    args = make(200, 256, 16, jnp.float32, 2)
    out = elbo_loss(*args, beta, tile_b=128)          # grid = (2,), last tile 72 rows
    jax.block_until_ready(out)
    ref = _elbo_ref(*args, beta)
    for o, r in zip(out, ref):
        assert jnp.allclose(o, r, rtol=1e-5, atol=1e-5), "case4 mismatch"

    # Case 5: bf16 inputs, upcast to f32 inside the kernel.
    args = make(256, 128, 16, jnp.bfloat16, 3)
    out = elbo_loss(*args, beta, tile_b=128)
    jax.block_until_ready(out)
    ref = _elbo_ref(*(a.astype(jnp.float32) for a in args), beta)
    for o, r in zip(out, ref):
        assert jnp.allclose(o, r, rtol=1e-2, atol=1e-2), "case5 mismatch"

    # Case 6: reduction="mean" path.
    args = make(8, 128, 32, jnp.float32, 0)
    tot_m, rec_m, kl_m = elbo_loss(*args, beta, reduction="mean")
    jax.block_until_ready((tot_m, rec_m, kl_m))
    t_ref, r_ref, k_ref = _elbo_ref(*args, beta)
    assert jnp.allclose(rec_m, r_ref.mean(), rtol=1e-5, atol=1e-5)
    assert jnp.allclose(kl_m, k_ref.mean(), rtol=1e-5, atol=1e-5)
    assert jnp.allclose(tot_m, r_ref.mean() + beta * k_ref.mean(),
                        rtol=1e-5, atol=1e-5)

    print("KERNEL_OK")
</pallas_src>

<mosaic_0001>
module attributes {stable_mosaic.version = 11 : i64} {
  func.func @_elbo_kernel(%arg0: i32, %arg1: memref<8x128xf32, #tpu.memory_space<vmem>>, %arg2: memref<8x128xf32, #tpu.memory_space<vmem>>, %arg3: memref<8x32xf32, #tpu.memory_space<vmem>>, %arg4: memref<8x32xf32, #tpu.memory_space<vmem>>, %arg5: memref<3x8xf32, #tpu.memory_space<vmem>>) attributes {dimension_semantics = [#tpu.dimension_semantics<parallel>], iteration_bounds = array<i64: 1>, scalar_prefetch = 0 : i64, scratch_operands = 0 : i64, tpu.core_type = #tpu.core_type<tc>, window_params = [{transform_indices = @transform_0, window_bounds = array<i64: 8, 128>}, {transform_indices = @transform_1, window_bounds = array<i64: 8, 128>}, {transform_indices = @transform_2, window_bounds = array<i64: 8, 32>}, {transform_indices = @transform_3, window_bounds = array<i64: 8, 32>}, {transform_indices = @transform_4, window_bounds = array<i64: 3, 8>}]} {
    %c0 = arith.constant 0 : index
    %c0_0 = arith.constant 0 : index
    %0 = vector.load %arg1[%c0, %c0_0] : memref<8x128xf32, #tpu.memory_space<vmem>>, vector<8x128xf32>
    %c0_1 = arith.constant 0 : index
    %c0_2 = arith.constant 0 : index
    %1 = vector.load %arg2[%c0_1, %c0_2] : memref<8x128xf32, #tpu.memory_space<vmem>>, vector<8x128xf32>
    %c0_3 = arith.constant 0 : index
    %c0_4 = arith.constant 0 : index
    %2 = vector.load %arg3[%c0_3, %c0_4] : memref<8x32xf32, #tpu.memory_space<vmem>>, vector<8x32xf32>
    %c0_5 = arith.constant 0 : index
    %c0_6 = arith.constant 0 : index
    %3 = vector.load %arg4[%c0_5, %c0_6] : memref<8x32xf32, #tpu.memory_space<vmem>>, vector<8x32xf32>
    %4 = arith.subf %0, %1 : vector<8x128xf32>
    %5 = arith.mulf %4, %4 : vector<8x128xf32>
    %cst = arith.constant dense<0.000000e+00> : vector<8xf32>
    %6 = vector.multi_reduction <add>, %5, %cst [1] : vector<8x128xf32> to vector<8xf32>
    %cst_7 = arith.constant 1.000000e+00 : f32
    %7 = vector.broadcast %cst_7 : f32 to vector<8x32xf32>
    %8 = arith.addf %3, %7 : vector<8x32xf32>
    %9 = arith.mulf %2, %2 : vector<8x32xf32>
    %10 = arith.subf %8, %9 : vector<8x32xf32>
    %11 = math.exp %3 : vector<8x32xf32>
    %12 = arith.subf %10, %11 : vector<8x32xf32>
    %cst_8 = arith.constant dense<0.000000e+00> : vector<8xf32>
    %13 = vector.multi_reduction <add>, %12, %cst_8 [1] : vector<8x32xf32> to vector<8xf32>
    %cst_9 = arith.constant -5.000000e-01 : f32
    %14 = vector.broadcast %cst_9 : f32 to vector<8xf32>
    %15 = arith.mulf %14, %13 : vector<8xf32>
    %cst_10 = arith.constant 5.000000e-01 : f32
    %16 = vector.broadcast %cst_10 : f32 to vector<8xf32>
    %17 = arith.mulf %16, %15 : vector<8xf32>
    %18 = arith.addf %6, %17 : vector<8xf32>
    %c0_11 = arith.constant 0 : index
    %c0_12 = arith.constant 0 : index
    %19 = vector.load %arg5[%c0_11, %c0_12] : memref<3x8xf32, #tpu.memory_space<vmem>>, vector<1x8xf32>
    %20 = vector.shape_cast %19 : vector<1x8xf32> to vector<8xf32>
    %21 = vector.shape_cast %18 : vector<8xf32> to vector<1x8xf32>
    tpu.vector_store %arg5[%c0_11, %c0_12], %21 {strides = array<i32>} : memref<3x8xf32, #tpu.memory_space<vmem>>, vector<1x8xf32>,
    %c1 = arith.constant 1 : index
    %c0_13 = arith.constant 0 : index
    %22 = vector.load %arg5[%c1, %c0_13] : memref<3x8xf32, #tpu.memory_space<vmem>>, vector<1x8xf32>
    %23 = vector.shape_cast %22 : vector<1x8xf32> to vector<8xf32>
    %24 = vector.shape_cast %6 : vector<8xf32> to vector<1x8xf32>
    tpu.vector_store %arg5[%c1, %c0_13], %24 {strides = array<i32>} : memref<3x8xf32, #tpu.memory_space<vmem>>, vector<1x8xf32>,
    %c2 = arith.constant 2 : index
    %c0_14 = arith.constant 0 : index
    %25 = vector.load %arg5[%c2, %c0_14] : memref<3x8xf32, #tpu.memory_space<vmem>>, vector<1x8xf32>
    %26 = vector.shape_cast %25 : vector<1x8xf32> to vector<8xf32>
    %27 = vector.shape_cast %15 : vector<8xf32> to vector<1x8xf32>
    tpu.vector_store %arg5[%c2, %c0_14], %27 {strides = array<i32>} : memref<3x8xf32, #tpu.memory_space<vmem>>, vector<1x8xf32>,
    return
  }
  func.func @transform_0(%arg0: i32) -> (i32, i32) {
    %c0_i32 = arith.constant 0 : i32
    %c0_i32_0 = arith.constant 0 : i32
    return %arg0, %c0_i32 : i32, i32
  }
  func.func @transform_1(%arg0: i32) -> (i32, i32) {
    %c0_i32 = arith.constant 0 : i32
    %c0_i32_0 = arith.constant 0 : i32
    return %arg0, %c0_i32 : i32, i32
  }
  func.func @transform_2(%arg0: i32) -> (i32, i32) {
    %c0_i32 = arith.constant 0 : i32
    %c0_i32_0 = arith.constant 0 : i32
    return %arg0, %c0_i32 : i32, i32
  }
  func.func @transform_3(%arg0: i32) -> (i32, i32) {
    %c0_i32 = arith.constant 0 : i32
    %c0_i32_0 = arith.constant 0 : i32
    return %arg0, %c0_i32 : i32, i32
  }
  func.func @transform_4(%arg0: i32) -> (i32, i32) {
    %c0_i32 = arith.constant 0 : i32
    %c0_i32_0 = arith.constant 0 : i32
    return %c0_i32, %arg0 : i32, i32
  }
}

</mosaic_0001>

<bundles_post_ra>
// kernel: tpu_custom_call.1
= control target key start
LH: loop header
LB: loop body
LE: loop exit
PB: predicated region body
PF: predicated region fallthrough
CT: control target
= control target key end

     0   :  { %9 = vsyncpa [#allocation3], 0  ;;  %s294_s0 = inlined_call_operand.hbm [shape: f32[8,128], index: 0, kind: input, shape index: {}]   ;;  %s295_s1 = inlined_call_operand.hbm [shape: f32[8,128], index: 1, kind: input, shape index: {}]   ;;  %s296_s2 = inlined_call_operand.hbm [shape: f32[8,32], index: 2, kind: input, shape index: {}]   ;;  %s297_s3 = inlined_call_operand.vmem [shape: f32[8,32], index: 3, kind: input, shape index: {}]   ;;  %s298_s4 = inlined_call_operand.hbm [shape: f32[3,8], index: 4, kind: output, shape index: {}]  }
   0x1   :  { %10 = vsyncpa [#allocation6], 0 }
   0x2   :  { %11 = vsyncpa [#allocation4], 0  ;;  %s214_s15 = smov [#allocation5]   ;;  %s215_s17 = smov [#allocation2]  }
   0x3   :  { %s28_s16 = sshll.u32 %s214_s15, 4  ;;  %s18_s18 = sshll.u32 %s215_s17, 4  ;;  %s29_s16 = int_to_ptr.vmem [resolvable:$true] %s28_s16  ;;  %s19_s18 = int_to_ptr.vmem [resolvable:$true] %s18_s18 }
   0x4   :  { %s120_s21 = scalar_lea.hbm %s295_s1, 128 }
   0x5   :  { %p121_p0 = scmp.ne.s32.totalorder %s295_s1, %s120_s21  ;;  %p124_p1 = scmp.lt.u32.totalorder %s120_s21, %s295_s1 }
   0x7   :  { %p126_p2 = pnand %p124_p1, %p121_p0 }
   0x9   :  { %129 = shalt.err (!%p126_p2)
}
   0xa   :  { %s130_s26 = scalar_lea.vmem %s29_s16, 128  ;;  %p135_p4 = scmp.lt.s32.totalorder %s29_s16, %s29_s16 }
   0xb   :  { %p131_p3 = scmp.ne.s32.totalorder %s29_s16, %s130_s26  ;;  %p136_p5 = scmp.lt.s32.totalorder %s130_s26, %s130_s26 }
   0xd   :  { %p137_p6 = por %p136_p5, %p135_p4 }
   0xf   :  { %p138_p7 = pnand %p137_p6, %p131_p3 }
  0x11   :  { %141 = shalt.err (!%p138_p7)
}
  0x12   :  { %31 = dma.hbm_to_vmem [thread:$0]  %s295_s1, 128, %s29_s16, [#allocation6]  }
  0x13   :  { %s142_s5 = scalar_lea.hbm %s294_s0, 128 }
  0x14   :  { %p143_p8 = scmp.ne.s32.totalorder %s294_s0, %s142_s5  ;;  %p146_p9 = scmp.lt.u32.totalorder %s142_s5, %s294_s0 }
  0x16   :  { %p148_p10 = pnand %p146_p9, %p143_p8 }
  0x18   :  { %151 = shalt.err (!%p148_p10)
}
  0x19   :  { %s152_s10 = scalar_lea.vmem %s19_s18, 128  ;;  %p157_p12 = scmp.lt.s32.totalorder %s19_s18, %s19_s18 }
  0x1a   :  { %p153_p11 = scmp.ne.s32.totalorder %s19_s18, %s152_s10  ;;  %p158_p13 = scmp.lt.s32.totalorder %s152_s10, %s152_s10 }
  0x1c   :  { %p159_p0 = por %p158_p13, %p157_p12 }
  0x1e   :  { %p160_p1 = pnand %p159_p0, %p153_p11 }
  0x20   :  { %163 = shalt.err (!%p160_p1)
}
  0x21   :  { %21 = dma.hbm_to_vmem [thread:$0]  %s294_s0, 128, %s19_s18, [#allocation3]  }
  0x22   :  { %s216_s12 = smov [#allocation7]   ;;  %s164_s16 = scalar_lea.hbm %s296_s2, 128 }
  0x23   :  { %s38_s13 = sshll.u32 %s216_s12, 4  ;;  %p165_p2 = scmp.ne.s32.totalorder %s296_s2, %s164_s16  ;;  %s39_s13 = int_to_ptr.vmem [resolvable:$true] %s38_s13 }
  0x24   :  { %p168_p3 = scmp.lt.u32.totalorder %s164_s16, %s296_s2 }
  0x26   :  { %p170_p4 = pnand %p168_p3, %p165_p2 }
  0x28   :  { %173 = shalt.err (!%p170_p4)
}
  0x29   :  { %s174_s22 = scalar_lea.vmem %s39_s13, 128  ;;  %p179_p6 = scmp.lt.s32.totalorder %s39_s13, %s39_s13 }
  0x2a   :  { %p175_p5 = scmp.ne.s32.totalorder %s39_s13, %s174_s22  ;;  %p180_p7 = scmp.lt.s32.totalorder %s174_s22, %s174_s22 }
  0x2c   :  { %p181_p8 = por %p180_p7, %p179_p6 }
  0x2e   :  { %p182_p9 = pnand %p181_p8, %p175_p5 }
  0x30   :  { %185 = shalt.err (!%p182_p9)
}
  0x31   :  { %41 = dma.hbm_to_vmem [thread:$0]  %s296_s2, 128, %s39_s13, [#allocation6]  }
  0x32   :  { %208 = dma.done.wait [#allocation3], 128  }
  0x33   :  { %209 = vsyncadd [#allocation3], 4294967168 }
  0x34   :  { %210 = dma.done.wait [#allocation6], 256  }
  0x35   :  { %211 = vsyncadd [#allocation6], 4294967040  ;;  %v56_v0 = vld [vmem:[%s297_s3] sm:$0xff]  ;;  %v55_v2 = vld [vmem:[#allocation7] sm:$0xff]  ;;  %vm67_vm0 = vcmask 261120   ;;  %v75_v13 = vlaneseq  ;;  %vm82_vm1 = vcmask 57344  }
  0x36   :  { %v64_v1 = vmul.f32 1.442695, %v56_v0  ;;  %v61_v3 = vadd.f32 1.0, %v56_v0  ;;  %v62_v4 = vmul.f32 %v55_v2, %v55_v2  ;;  %v53_v6 = vld [vmem:[#allocation2] sm:$0xff]  ;;  %v54_v7 = vld [vmem:[#allocation5] sm:$0xff]  ;;  %s217_s2 = smov [#allocation8]  }
  0x37   :  { %v57_v9 = vsub.f32 %v53_v6, %v54_v7  ;;  %v76_v14 = vand.u32 127, %v75_v13  ;;  %v78_v15 = vshrl.u32 %v75_v13, 7  ;;  %s104_s3 = sshll.u32 %s217_s2, 4  ;;  %s105_s3 = int_to_ptr.vmem [resolvable:$true] %s104_s3 }
  0x38   :  { %118 = vpow2.f32 %v64_v1  ;;  %v63_v5 = vsub.f32 %v61_v3, %v62_v4  ;;  %s186_s25 = scalar_lea.vmem %s105_s3, 64  ;;  %p191_p11 = scmp.lt.s32.totalorder %s105_s3, %s105_s3 }
  0x39   :  { %v58_v12 = vmul.f32 %v57_v9, %v57_v9  ;;  %v79_v16 = vsub.s32 %v76_v14, %v78_v15  ;;  %p187_p10 = scmp.ne.s32.totalorder %s105_s3, %s186_s25  ;;  %p192_p12 = scmp.lt.s32.totalorder %s186_s25, %s186_s25 }
  0x3b   :  { %p193_p13 = por %p192_p12, %p191_p11 }
  0x3d   :  { %p194_p0 = pnand %p193_p13, %p187_p10 }
  0x42   :  { %v119_v8 = vpop.eup %118 }
  0x43   :  { %v66_v10 = vsub.f32 %v63_v5, %v119_v8 }
  0x45   :  { %v68_v11 = vsel %vm67_vm0, %v66_v10, 0.0 }
  0x46   :  { %69 = vadd.xlane.f32.xlu0 %v68_v11 }
  0x4a   :  { %59 = vadd.xlane.f32.xlu0 %v58_v12 }
  0xd3   :  { %v70_v17 = vpop.xlane.xlu0 %69 }
  0xd4   :  { %v71_v18 = vmul.f32 -0.5, %v70_v17 }
  0xd6   :  { %v95_v19 = vrot.slane %v71_v18, %v79_v16  ;;  %v72_v20 = vmul.f32 0.5, %v71_v18 }
  0xd7   :  { %v60_v21 = vpop.xlane.xlu0 %59 }
  0xd8   :  { %v73_v22 = vadd.f32 %v72_v20, %v60_v21  ;;  %v88_v23 = vrot.slane %v60_v21, %v79_v16  ;;  %97 = vst.msk [vmem:[#allocation8 + $0x2] sm:$0x1] %vm82_vm1, %v95_v19 }
  0xda   :  { %v80_v24 = vrot.slane %v73_v22, %v79_v16  ;;  %90 = vst.msk [vmem:[#allocation8 + $0x1] sm:$0x1] %vm82_vm1, %v88_v23 }
  0xdc   :  { %83 = vst.msk [vmem:[#allocation8] sm:$0x1] %vm82_vm1, %v80_v24 }
  0xdd   :  { %197 = shalt.err (!%p194_p0)
}
  0xde   :  { %s198_s28 = scalar_lea.hbm %s298_s4, 64 }
  0xdf   :  { %p199_p1 = scmp.ne.s32.totalorder %s298_s4, %s198_s28  ;;  %p202_p2 = scmp.lt.u32.totalorder %s198_s28, %s298_s4 }
  0xe1   :  { %p204_p3 = pnand %p202_p2, %p199_p1 }
  0xe3   :  { %207 = shalt.err (!%p204_p3)
}
  0xe4   :  { %107 = dma.vmem_to_hbm [thread:$0]  %s105_s3, 64, %s298_s4, [#allocation4]  }
  0xe5   :  { %212 = dma.done.wait [#allocation4], 64  }
  0xe6   :  { %213 = vsyncadd [#allocation4], 4294967232 }
  0xe7   :  { %111 = vsyncpa [#allocation3], 1 }
  0xe8   :  { %112 = vsyncpa [#allocation6], 1 }
  0xe9   :  { %113 = vsyncpa [#allocation4], 1 }

</bundles_post_ra>
